<compile_context>
chip_gen: v7x
topology: tpu7x:2x2x1
jax: 0.10.0
libtpu: 0.0.40
codegen_flags: <defaults>
</compile_context>

<pallas_src>
import functools

import jax
import jax.numpy as jnp
from jax.experimental import pallas as pl
from jax.experimental.pallas import tpu as pltpu


def _round_up(n, m):
    return (n + m - 1) // m * m


def _choose_tb(b):
    """Batch tile: multiple of 8 (f32 sublane), <=512, and with >=2 grid steps
    whenever possible so the parallel batch grid shards across both v7x TCs."""
    bp8 = _round_up(max(b, 1), 8)
    if bp8 <= 8:
        return 8
    half = _round_up(pl.cdiv(bp8, 2), 8)
    return min(512, half)


def _vae_kernel(x_ref, eps_ref,
                we1_ref, be1_ref, we2_ref, be2_ref,
                wd1_ref, bd1_ref, wd2_ref, bd2_ref,
                recon_ref, g_ref, logv_ref, z_ref,
                *, slope, lp, hp, split_l2):
    f32 = jnp.float32
    x = x_ref[...]
    eps = eps_ref[...]

    # ---- encoder layer 1: g- and logv-MLPs fused -> x @ [Wg1 | Wv1] ----
    h = jnp.dot(x.astype(we1_ref.dtype), we1_ref[...],
                preferred_element_type=f32) + be1_ref[...]
    h = jnp.where(h >= 0, h, slope * h)                      # leaky_relu(slope)

    # ---- encoder layer 2 ----
    if split_l2:
        # v5e path: two 128x128 matmuls, skipping the structurally-zero blocks.
        g = jnp.dot(h[:, :hp].astype(we2_ref.dtype), we2_ref[0],
                    preferred_element_type=f32) + be2_ref[0]
        logv = jnp.dot(h[:, hp:].astype(we2_ref.dtype), we2_ref[1],
                       preferred_element_type=f32) + be2_ref[1]
    else:
        # v6e/v7x path: one block-diagonal (2Hp x 2Lp) matmul -> [g | logv],
        # a single native 256x256 MXU tile at default sizes.
        gl = jnp.dot(h.astype(we2_ref.dtype), we2_ref[...],
                     preferred_element_type=f32) + be2_ref[...]
        g = gl[:, :lp]
        logv = gl[:, lp:]

    # ---- reparameterize ----
    z = g + eps * jnp.exp(0.5 * logv)

    # ---- decoder f ----
    hd = jnp.dot(z.astype(wd1_ref.dtype), wd1_ref[...],
                 preferred_element_type=f32) + bd1_ref[...]
    hd = jnp.where(hd >= 0, hd, slope * hd)
    f = jnp.dot(hd.astype(wd2_ref.dtype), wd2_ref[...],
                preferred_element_type=f32) + bd2_ref[...]

    # Lane-dense, full-width stores (128-lane aligned slabs; no concat temp).
    recon_ref[...] = jax.nn.sigmoid(f)
    g_ref[...] = g
    logv_ref[...] = logv
    z_ref[...] = z


def pack_params(params, *, split_encoder_l2=None, weight_dtype=jnp.float32):
    """One-time weight padding / fusion. Call ONCE and reuse across forwards —
    these pad / update-slice ops used to run inside every jitted forward and
    cost more HBM traffic than the kernel itself."""
    f32 = jnp.float32
    D, H = params["wg1"].shape
    L = params["wg2"].shape[1]
    Dp, Hp, Lp = _round_up(D, 128), _round_up(H, 128), _round_up(L, 128)

    if split_encoder_l2 is None:
        # v5e's MXU is 128x128: the block-diag 2Hp x 2Lp weight wastes half its
        # tile passes on zeros there; v6e/v7x have a native 256x256 MXU.
        try:
            kind = jax.devices()[0].device_kind.lower()
        except Exception:
            kind = ""
        split_encoder_l2 = "v5" in kind

    # encoder layer 1, fused: x @ [Wg1 | Wv1]
    we1 = jnp.zeros((Dp, 2 * Hp), f32)
    we1 = we1.at[:D, :H].set(params["wg1"])
    we1 = we1.at[:D, Hp:Hp + H].set(params["wv1"])
    be1 = jnp.zeros((1, 2 * Hp), f32)
    be1 = be1.at[:, :H].set(params["bg1"])
    be1 = be1.at[:, Hp:Hp + H].set(params["bv1"])

    if split_encoder_l2:
        we2 = jnp.zeros((2, Hp, Lp), f32)
        we2 = we2.at[0, :H, :L].set(params["wg2"])
        we2 = we2.at[1, :H, :L].set(params["wv2"])
        be2 = jnp.zeros((2, 1, Lp), f32)
        be2 = be2.at[0, :, :L].set(params["bg2"])
        be2 = be2.at[1, :, :L].set(params["bv2"])
    else:
        we2 = jnp.zeros((2 * Hp, 2 * Lp), f32)
        we2 = we2.at[:H, :L].set(params["wg2"])
        we2 = we2.at[Hp:Hp + H, Lp:Lp + L].set(params["wv2"])
        be2 = jnp.zeros((1, 2 * Lp), f32)
        be2 = be2.at[:, :L].set(params["bg2"])
        be2 = be2.at[:, Lp:Lp + L].set(params["bv2"])

    wd1 = jnp.zeros((Lp, Hp), f32).at[:L, :H].set(params["wf1"])
    bd1 = jnp.zeros((1, Hp), f32).at[:, :H].set(params["bf1"])
    wd2 = jnp.zeros((Hp, Dp), f32).at[:H, :D].set(params["wf2"])
    bd2 = jnp.zeros((Hp := Hp, Dp), f32).at[:H, :D].set(params["wf2"]) if False else wd2
    packed = {"we1": we1, "be1": be1, "we2": we2, "be2": be2,
              "wd1": wd1, "bd1": bd1,
              "wd2": jnp.zeros((Hp, Dp), f32).at[:H, :D].set(params["wf2"]),
              "bd2": jnp.zeros((1, Dp), f32).at[:, :D].set(params["bf2"])}
    # Optional bf16 weights (halves weight DMA) only if that traffic matters;
    # default f32 for accuracy — at these sizes the kernel is overhead-bound.
    packed = {k: (v.astype(weight_dtype) if k.startswith("w") else v)
              for k, v in packed.items()}
    return jax.device_put(packed)


@functools.partial(jax.jit, static_argnames=("slope",))
def discrete_vae_forward(x, eps, packed, slope=0.1):
    """x: (B, data_dim); eps: (B, latent_dim); packed = pack_params(params).
    Returns (recon, (g, logv), z)."""
    f32 = jnp.float32
    B, D = x.shape
    L = eps.shape[1]

    Dp = packed["we1"].shape[0]
    Hp = packed["wd1"].shape[1]
    Lp = packed["wd1"].shape[0]
    split_l2 = packed["we2"].ndim == 3

    TB = _choose_tb(B)
    Bp = _round_up(B, TB)

    # Pad streamed activations only when shapes actually require it.
    if (B, D) == (Bp, Dp):
        x_p = x.astype(f32)
    else:
        x_p = jnp.zeros((Bp, Dp), f32).at[:B, :D].set(x.astype(f32))
    if (B, L) == (Bp, Lp):
        eps_p = eps.astype(f32)
    else:
        eps_p = jnp.zeros((Bp, Lp), f32).at[:B, :L].set(eps.astype(f32))

    def batch_spec(cols):
        return pl.BlockSpec((TB, cols), lambda i: (i, 0))

    def resident_spec(shape):
        # Same block every batch step -> VMEM-resident weights, no re-DMA.
        # (If D/H ever grow toward v7x's 64 MiB VMEM, mark these with
        #  pipeline_mode=pl.Buffered(1) / raise vmem_limit_bytes.)
        return pl.BlockSpec(shape, lambda i: (0,) * len(shape))

    grid = (Bp // TB,)
    in_specs = [
        batch_spec(Dp), batch_spec(Lp),
        resident_spec(packed["we1"].shape), resident_spec(packed["be1"].shape),
        resident_spec(packed["we2"].shape), resident_spec(packed["be2"].shape),
        resident_spec(packed["wd1"].shape), resident_spec(packed["bd1"].shape),
        resident_spec(packed["wd2"].shape), resident_spec(packed["bd2"].shape),
    ]
    out_specs = (batch_spec(Dp), batch_spec(Lp), batch_spec(Lp), batch_spec(Lp))
    out_shapes = (jax.ShapeDtypeStruct((Bp, Dp), f32),
                  jax.ShapeDtypeStruct((Bp, Lp), f32),
                  jax.ShapeDtypeStruct((Bp, Lp), f32),
                  jax.ShapeDtypeStruct((Bp, Lp), f32))

    enc2 = (2 * Hp * Lp) if split_l2 else (2 * Hp * 2 * Lp)
    mm = Dp * 2 * Hp + enc2 + Lp * Hp + Hp * Dp
    wbytes = sum(int(v.size) * v.dtype.itemsize for v in packed.values())
    cost = pl.CostEstimate(
        flops=2 * Bp * mm,
        transcendentals=Bp * (Lp + Dp),
        bytes_accessed=4 * Bp * (2 * Dp + 4 * Lp) + wbytes,
    )

    recon_p, g_p, logv_p, z_p = pl.pallas_call(
        functools.partial(_vae_kernel, slope=float(slope), lp=Lp, hp=Hp,
                          split_l2=split_l2),
        out_shape=out_shapes,
        grid=grid,
        in_specs=in_specs,
        out_specs=out_specs,
        compiler_params=pltpu.CompilerParams(
            dimension_semantics=("parallel",)),
        cost_estimate=cost,
    )(x_p, eps_p, packed["we1"], packed["be1"], packed["we2"], packed["be2"],
      packed["wd1"], packed["bd1"], packed["wd2"], packed["bd2"])

    # Slice padding back off only when it exists (padded rows/lanes are garbage
    # by construction — e.g. sigmoid(0)=0.5 in padded recon rows).
    recon = recon_p if (B, D) == (Bp, Dp) else recon_p[:B, :D]
    if (B, L) == (Bp, Lp):
        g, logv, z = g_p, logv_p, z_p
    else:
        g, logv, z = g_p[:B, :L], logv_p[:B, :L], z_p[:B, :L]
    return recon, (g, logv), z


def init_params(key, data_dim, latent_dim, hidden_dim=20):
    """PyTorch nn.Linear-style uniform fan-in init; weights stored (in, out)."""
    def linear(k, in_dim, out_dim):
        kw, kb = jax.random.split(k)
        bound = in_dim ** -0.5
        w = jax.random.uniform(kw, (in_dim, out_dim), jnp.float32, -bound, bound)
        b = jax.random.uniform(kb, (1, out_dim), jnp.float32, -bound, bound)
        return w, b

    keys = jax.random.split(key, 6)
    p = {}
    p["wg1"], p["bg1"] = linear(keys[0], data_dim, hidden_dim)    # g: x -> hidden
    p["wg2"], p["bg2"] = linear(keys[1], hidden_dim, latent_dim)
    p["wv1"], p["bv1"] = linear(keys[2], data_dim, hidden_dim)    # logv: x -> hidden
    p["wv2"], p["bv2"] = linear(keys[3], hidden_dim, latent_dim)
    p["wf1"], p["bf1"] = linear(keys[4], latent_dim, hidden_dim)  # f: z -> hidden
    p["wf2"], p["bf2"] = linear(keys[5], hidden_dim, data_dim)
    return p


if __name__ == "__main__":
    data_dim = 16
    latent_dim = 8
    hidden_dim = 20
    batch = 16
    slope = 0.1   # DiscreteVAE default leaky_relu slope

    key = jax.random.PRNGKey(0)
    k_p, k_x, k_e = jax.random.split(key, 3)
    params = init_params(k_p, data_dim, latent_dim, hidden_dim)
    packed = pack_params(params)   # one-time packing, reused across calls

    x = jax.random.uniform(k_x, (batch, data_dim), jnp.float32)
    # TODO(synk): torch.randn_like() noise is supplied as an explicit eps input.
    eps = jax.random.normal(k_e, (batch, latent_dim), jnp.float32)

    recon, (g, logv), z = discrete_vae_forward(x, eps, packed, slope=slope)
    jax.block_until_ready((recon, g, logv, z))

    # Pure-JAX f32 reference of the same forward.
    def ref_forward(x, eps, p):
        lrelu = lambda t: jnp.where(t >= 0, t, slope * t)
        g_r = lrelu(x @ p["wg1"] + p["bg1"]) @ p["wg2"] + p["bg2"]
        lv_r = lrelu(x @ p["wv1"] + p["bv1"]) @ p["wv2"] + p["bv2"]
        z_r = g_r + eps * jnp.exp(0.5 * lv_r)
        f_r = lrelu(z_r @ p["wf1"] + p["bf1"]) @ p["wf2"] + p["bf2"]
        return jax.nn.sigmoid(f_r), g_r, lv_r, z_r

    refs = ref_forward(x, eps, params)
    for got, want in zip((recon, g, logv, z), refs):
        # f32 weights now; tolerance only covers matmul default-precision
        # differences between the MXU kernel and the XLA reference.
        assert jnp.allclose(got, want, atol=1e-2, rtol=1e-2), "mismatch vs reference"

    print("KERNEL_OK")
</pallas_src>

<mosaic_0001>
module attributes {stable_mosaic.version = 11 : i64} {
  func.func @_vae_kernel(%arg0: i32, %arg1: memref<8x128xf32, #tpu.memory_space<vmem>>, %arg2: memref<8x128xf32, #tpu.memory_space<vmem>>, %arg3: memref<128x256xf32, #tpu.memory_space<vmem>>, %arg4: memref<1x256xf32, #tpu.memory_space<vmem>>, %arg5: memref<256x256xf32, #tpu.memory_space<vmem>>, %arg6: memref<1x256xf32, #tpu.memory_space<vmem>>, %arg7: memref<128x128xf32, #tpu.memory_space<vmem>>, %arg8: memref<1x128xf32, #tpu.memory_space<vmem>>, %arg9: memref<128x128xf32, #tpu.memory_space<vmem>>, %arg10: memref<1x128xf32, #tpu.memory_space<vmem>>, %arg11: memref<8x128xf32, #tpu.memory_space<vmem>>, %arg12: memref<8x128xf32, #tpu.memory_space<vmem>>, %arg13: memref<8x128xf32, #tpu.memory_space<vmem>>, %arg14: memref<8x128xf32, #tpu.memory_space<vmem>>) attributes {dimension_semantics = [#tpu.dimension_semantics<parallel>], iteration_bounds = array<i64: 2>, scalar_prefetch = 0 : i64, scratch_operands = 0 : i64, tpu.core_type = #tpu.core_type<tc>, window_params = [{transform_indices = @transform_0, window_bounds = array<i64: 8, 128>}, {transform_indices = @transform_1, window_bounds = array<i64: 8, 128>}, {pipeline_mode = #tpu.pipeline_mode<synchronous>, transform_indices = @transform_2, window_bounds = array<i64: 128, 256>}, {pipeline_mode = #tpu.pipeline_mode<synchronous>, transform_indices = @transform_3, window_bounds = array<i64: 1, 256>}, {pipeline_mode = #tpu.pipeline_mode<synchronous>, transform_indices = @transform_4, window_bounds = array<i64: 256, 256>}, {pipeline_mode = #tpu.pipeline_mode<synchronous>, transform_indices = @transform_5, window_bounds = array<i64: 1, 256>}, {pipeline_mode = #tpu.pipeline_mode<synchronous>, transform_indices = @transform_6, window_bounds = array<i64: 128, 128>}, {pipeline_mode = #tpu.pipeline_mode<synchronous>, transform_indices = @transform_7, window_bounds = array<i64: 1, 128>}, {pipeline_mode = #tpu.pipeline_mode<synchronous>, transform_indices = @transform_8, window_bounds = array<i64: 128, 128>}, {pipeline_mode = #tpu.pipeline_mode<synchronous>, transform_indices = @transform_9, window_bounds = array<i64: 1, 128>}, {transform_indices = @transform_10, window_bounds = array<i64: 8, 128>}, {transform_indices = @transform_11, window_bounds = array<i64: 8, 128>}, {transform_indices = @transform_12, window_bounds = array<i64: 8, 128>}, {transform_indices = @transform_13, window_bounds = array<i64: 8, 128>}]} {
    %c0 = arith.constant 0 : index
    %c0_0 = arith.constant 0 : index
    %0 = vector.load %arg1[%c0, %c0_0] : memref<8x128xf32, #tpu.memory_space<vmem>>, vector<8x128xf32>
    %c0_1 = arith.constant 0 : index
    %c0_2 = arith.constant 0 : index
    %1 = vector.load %arg2[%c0_1, %c0_2] : memref<8x128xf32, #tpu.memory_space<vmem>>, vector<8x128xf32>
    %c0_3 = arith.constant 0 : index
    %c0_4 = arith.constant 0 : index
    %2 = vector.load %arg3[%c0_3, %c0_4] : memref<128x256xf32, #tpu.memory_space<vmem>>, vector<128x256xf32>
    %cst = arith.constant dense<0.000000e+00> : vector<8x256xf32>
    %3 = tpu.matmul %0, %2, %cst {dimension_numbers = #tpu.dot_dimension_numbers<[1], [0], [0], [1], [0, 0, 1, 1], [], []>} : vector<8x128xf32>, vector<128x256xf32>, vector<8x256xf32> -> vector<8x256xf32>
    %c0_5 = arith.constant 0 : index
    %c0_6 = arith.constant 0 : index
    %4 = vector.load %arg4[%c0_5, %c0_6] : memref<1x256xf32, #tpu.memory_space<vmem>>, vector<1x256xf32>
    %5 = vector.broadcast %4 : vector<1x256xf32> to vector<8x256xf32>
    %6 = arith.addf %3, %5 : vector<8x256xf32>
    %cst_7 = arith.constant 0.000000e+00 : f32
    %7 = vector.broadcast %cst_7 : f32 to vector<8x256xf32>
    %8 = arith.cmpf oge, %6, %7 : vector<8x256xf32>
    %cst_8 = arith.constant 1.000000e-01 : f32
    %9 = vector.broadcast %cst_8 : f32 to vector<8x256xf32>
    %10 = arith.mulf %9, %6 : vector<8x256xf32>
    %11 = arith.select %8, %6, %10 : vector<8x256xi1>, vector<8x256xf32>
    %c0_9 = arith.constant 0 : index
    %c0_10 = arith.constant 0 : index
    %12 = vector.load %arg5[%c0_9, %c0_10] : memref<256x256xf32, #tpu.memory_space<vmem>>, vector<256x256xf32>
    %cst_11 = arith.constant dense<0.000000e+00> : vector<8x256xf32>
    %13 = tpu.matmul %11, %12, %cst_11 {dimension_numbers = #tpu.dot_dimension_numbers<[1], [0], [0], [1], [0, 0, 1, 1], [], []>} : vector<8x256xf32>, vector<256x256xf32>, vector<8x256xf32> -> vector<8x256xf32>
    %c0_12 = arith.constant 0 : index
    %c0_13 = arith.constant 0 : index
    %14 = vector.load %arg6[%c0_12, %c0_13] : memref<1x256xf32, #tpu.memory_space<vmem>>, vector<1x256xf32>
    %15 = vector.broadcast %14 : vector<1x256xf32> to vector<8x256xf32>
    %16 = arith.addf %13, %15 : vector<8x256xf32>
    %17 = vector.extract_strided_slice %16 {offsets = [0, 0], sizes = [8, 128], strides = [1, 1]} : vector<8x256xf32> to vector<8x128xf32>
    %18 = vector.extract_strided_slice %16 {offsets = [0, 128], sizes = [8, 128], strides = [1, 1]} : vector<8x256xf32> to vector<8x128xf32>
    %cst_14 = arith.constant 5.000000e-01 : f32
    %19 = vector.broadcast %cst_14 : f32 to vector<8x128xf32>
    %20 = arith.mulf %19, %18 : vector<8x128xf32>
    %21 = math.exp %20 : vector<8x128xf32>
    %22 = arith.mulf %1, %21 : vector<8x128xf32>
    %23 = arith.addf %17, %22 : vector<8x128xf32>
    %c0_15 = arith.constant 0 : index
    %c0_16 = arith.constant 0 : index
    %24 = vector.load %arg7[%c0_15, %c0_16] : memref<128x128xf32, #tpu.memory_space<vmem>>, vector<128x128xf32>
    %cst_17 = arith.constant dense<0.000000e+00> : vector<8x128xf32>
    %25 = tpu.matmul %23, %24, %cst_17 {dimension_numbers = #tpu.dot_dimension_numbers<[1], [0], [0], [1], [0, 0, 1, 1], [], []>} : vector<8x128xf32>, vector<128x128xf32>, vector<8x128xf32> -> vector<8x128xf32>
    %c0_18 = arith.constant 0 : index
    %c0_19 = arith.constant 0 : index
    %26 = vector.load %arg8[%c0_18, %c0_19] : memref<1x128xf32, #tpu.memory_space<vmem>>, vector<1x128xf32>
    %27 = vector.broadcast %26 : vector<1x128xf32> to vector<8x128xf32>
    %28 = arith.addf %25, %27 : vector<8x128xf32>
    %cst_20 = arith.constant 0.000000e+00 : f32
    %29 = vector.broadcast %cst_20 : f32 to vector<8x128xf32>
    %30 = arith.cmpf oge, %28, %29 : vector<8x128xf32>
    %cst_21 = arith.constant 1.000000e-01 : f32
    %31 = vector.broadcast %cst_21 : f32 to vector<8x128xf32>
    %32 = arith.mulf %31, %28 : vector<8x128xf32>
    %33 = arith.select %30, %28, %32 : vector<8x128xi1>, vector<8x128xf32>
    %c0_22 = arith.constant 0 : index
    %c0_23 = arith.constant 0 : index
    %34 = vector.load %arg9[%c0_22, %c0_23] : memref<128x128xf32, #tpu.memory_space<vmem>>, vector<128x128xf32>
    %cst_24 = arith.constant dense<0.000000e+00> : vector<8x128xf32>
    %35 = tpu.matmul %33, %34, %cst_24 {dimension_numbers = #tpu.dot_dimension_numbers<[1], [0], [0], [1], [0, 0, 1, 1], [], []>} : vector<8x128xf32>, vector<128x128xf32>, vector<8x128xf32> -> vector<8x128xf32>
    %c0_25 = arith.constant 0 : index
    %c0_26 = arith.constant 0 : index
    %36 = vector.load %arg10[%c0_25, %c0_26] : memref<1x128xf32, #tpu.memory_space<vmem>>, vector<1x128xf32>
    %37 = vector.broadcast %36 : vector<1x128xf32> to vector<8x128xf32>
    %38 = arith.addf %35, %37 : vector<8x128xf32>
    %39 = arith.negf %38 : vector<8x128xf32>
    %40 = math.exp %39 : vector<8x128xf32>
    %cst_27 = arith.constant 1.000000e+00 : f32
    %41 = vector.broadcast %cst_27 : f32 to vector<8x128xf32>
    %42 = arith.addf %41, %40 : vector<8x128xf32>
    %43 = arith.divf %41, %42 : vector<8x128xf32>
    %c0_28 = arith.constant 0 : index
    %c0_29 = arith.constant 0 : index
    %44 = vector.load %arg11[%c0_28, %c0_29] : memref<8x128xf32, #tpu.memory_space<vmem>>, vector<8x128xf32>
    tpu.vector_store %arg11[%c0_28, %c0_29], %43 {strides = array<i32>} : memref<8x128xf32, #tpu.memory_space<vmem>>, vector<8x128xf32>,
    %c0_30 = arith.constant 0 : index
    %c0_31 = arith.constant 0 : index
    %45 = vector.load %arg12[%c0_30, %c0_31] : memref<8x128xf32, #tpu.memory_space<vmem>>, vector<8x128xf32>
    tpu.vector_store %arg12[%c0_30, %c0_31], %17 {strides = array<i32>} : memref<8x128xf32, #tpu.memory_space<vmem>>, vector<8x128xf32>,
    %c0_32 = arith.constant 0 : index
    %c0_33 = arith.constant 0 : index
    %46 = vector.load %arg13[%c0_32, %c0_33] : memref<8x128xf32, #tpu.memory_space<vmem>>, vector<8x128xf32>
    tpu.vector_store %arg13[%c0_32, %c0_33], %18 {strides = array<i32>} : memref<8x128xf32, #tpu.memory_space<vmem>>, vector<8x128xf32>,
    %c0_34 = arith.constant 0 : index
    %c0_35 = arith.constant 0 : index
    %47 = vector.load %arg14[%c0_34, %c0_35] : memref<8x128xf32, #tpu.memory_space<vmem>>, vector<8x128xf32>
    tpu.vector_store %arg14[%c0_34, %c0_35], %23 {strides = array<i32>} : memref<8x128xf32, #tpu.memory_space<vmem>>, vector<8x128xf32>,
    return
  }
  func.func @transform_0(%arg0: i32) -> (i32, i32) {
    %c0_i32 = arith.constant 0 : i32
    %c0_i32_0 = arith.constant 0 : i32
    return %arg0, %c0_i32 : i32, i32
  }
  func.func @transform_1(%arg0: i32) -> (i32, i32) {
    %c0_i32 = arith.constant 0 : i32
    %c0_i32_0 = arith.constant 0 : i32
    return %arg0, %c0_i32 : i32, i32
  }
  func.func @transform_2(%arg0: i32) -> (i32, i32) {
    %c0_i32 = arith.constant 0 : i32
    %c0_i32_0 = arith.constant 0 : i32
    %c0_i32_1 = arith.constant 0 : i32
    return %c0_i32, %c0_i32_0 : i32, i32
  }
  func.func @transform_3(%arg0: i32) -> (i32, i32) {
    %c0_i32 = arith.constant 0 : i32
    %c0_i32_0 = arith.constant 0 : i32
    %c0_i32_1 = arith.constant 0 : i32
    return %c0_i32, %c0_i32_0 : i32, i32
  }
  func.func @transform_4(%arg0: i32) -> (i32, i32) {
    %c0_i32 = arith.constant 0 : i32
    %c0_i32_0 = arith.constant 0 : i32
    %c0_i32_1 = arith.constant 0 : i32
    return %c0_i32, %c0_i32_0 : i32, i32
  }
  func.func @transform_5(%arg0: i32) -> (i32, i32) {
    %c0_i32 = arith.constant 0 : i32
    %c0_i32_0 = arith.constant 0 : i32
    %c0_i32_1 = arith.constant 0 : i32
    return %c0_i32, %c0_i32_0 : i32, i32
  }
  func.func @transform_6(%arg0: i32) -> (i32, i32) {
    %c0_i32 = arith.constant 0 : i32
    %c0_i32_0 = arith.constant 0 : i32
    %c0_i32_1 = arith.constant 0 : i32
    return %c0_i32, %c0_i32_0 : i32, i32
  }
  func.func @transform_7(%arg0: i32) -> (i32, i32) {
    %c0_i32 = arith.constant 0 : i32
    %c0_i32_0 = arith.constant 0 : i32
    %c0_i32_1 = arith.constant 0 : i32
    return %c0_i32, %c0_i32_0 : i32, i32
  }
  func.func @transform_8(%arg0: i32) -> (i32, i32) {
    %c0_i32 = arith.constant 0 : i32
    %c0_i32_0 = arith.constant 0 : i32
    %c0_i32_1 = arith.constant 0 : i32
    return %c0_i32, %c0_i32_0 : i32, i32
  }
  func.func @transform_9(%arg0: i32) -> (i32, i32) {
    %c0_i32 = arith.constant 0 : i32
    %c0_i32_0 = arith.constant 0 : i32
    %c0_i32_1 = arith.constant 0 : i32
    return %c0_i32, %c0_i32_0 : i32, i32
  }
  func.func @transform_10(%arg0: i32) -> (i32, i32) {
    %c0_i32 = arith.constant 0 : i32
    %c0_i32_0 = arith.constant 0 : i32
    return %arg0, %c0_i32 : i32, i32
  }
  func.func @transform_11(%arg0: i32) -> (i32, i32) {
    %c0_i32 = arith.constant 0 : i32
    %c0_i32_0 = arith.constant 0 : i32
    return %arg0, %c0_i32 : i32, i32
  }
  func.func @transform_12(%arg0: i32) -> (i32, i32) {
    %c0_i32 = arith.constant 0 : i32
    %c0_i32_0 = arith.constant 0 : i32
    return %arg0, %c0_i32 : i32, i32
  }
  func.func @transform_13(%arg0: i32) -> (i32, i32) {
    %c0_i32 = arith.constant 0 : i32
    %c0_i32_0 = arith.constant 0 : i32
    return %arg0, %c0_i32 : i32, i32
  }
}

</mosaic_0001>

<bundles_post_ra>
// kernel: discrete_vae_forward.1
= control target key start
LH: loop header
LB: loop body
LE: loop exit
PB: predicated region body
PF: predicated region fallthrough
CT: control target
= control target key end

     0   :  { %s2104_s0 = inlined_call_operand.vmem [shape: f32[16,128], index: 0, kind: input, shape index: {}]   ;;  %s2105_s1 = inlined_call_operand.vmem [shape: f32[16,128], index: 1, kind: input, shape index: {}]   ;;  %s2106_s2 = inlined_call_operand.hbm [shape: f32[128,256], index: 2, kind: input, shape index: {}]   ;;  %s2107_s3 = inlined_call_operand.vmem [shape: f32[1,256], index: 3, kind: input, shape index: {}]   ;;  %s2108_s4 = inlined_call_operand.hbm [shape: f32[256,256], index: 4, kind: input, shape index: {}]   ;;  %s2109_s5 = inlined_call_operand.vmem [shape: f32[1,256], index: 5, kind: input, shape index: {}]   ;;  %s2110_s6 = inlined_call_operand.vmem [shape: f32[128,128], index: 6, kind: input, shape index: {}]   ;;  %s2111_s7 = inlined_call_operand.vmem [shape: f32[1,128], index: 7, kind: input, shape index: {}]   ;;  %s2112_s8 = inlined_call_operand.hbm [shape: f32[128,128], index: 8, kind: input, shape index: {}]   ;;  %s2113_s9 = inlined_call_operand.vmem [shape: f32[1,128], index: 9, kind: input, shape index: {}]   ;;  %s2114_s10 = inlined_call_operand.hbm [shape: f32[16,128], index: 10, kind: output, shape index: {0}]   ;;  %s2115_s11 = inlined_call_operand.vmem [shape: f32[16,128], index: 11, kind: output, shape index: {1}]   ;;  %s2116_s12 = inlined_call_operand.vmem [shape: f32[16,128], index: 12, kind: output, shape index: {2}]   ;;  %s2117_s13 = inlined_call_operand.vmem [shape: f32[16,128], index: 13, kind: output, shape index: {3}]  }
   0x1   :  { %2130 = sst [smem:[#allocation19_spill]] %s2113_s9 }
   0x2   :  { %2131 = sst [smem:[#allocation20_spill]] %s2114_s10 }
   0x3   :  { %19 = vsyncpa [#allocation3], 0 }
   0x4   :  { %20 = vsyncpa [#allocation6], 0 }
   0x5   :  { %21 = vsyncpa [#allocation4], 0 }
   0x6   :  { %23 = vsyncpa [#allocation4 + $0x1], 0  ;;  %s1802_s25 = smov 0   ;;  %s1804_s26 = smov 0  }
   0x7   :  { %s1806_s27 = smov 0   ;;  %s1808_s28 = smov 0  }
   0x8 LB: > { %2132 = sst [smem:[#allocation12_spill]] %s1707_s25  ;;  %s1823_s29 = sadd.s32 4294967295, %s1719_s28   ;;  %s1719_s28 = sphi %s1808_s28, %s2158_s28   ;;  %s1715_s27 = sphi %s1806_s27, %s2160_s27   ;;  %s1711_s26 = sphi %s1804_s26, %s2162_s26   ;;  %s1707_s25 = sphi %s1802_s25, %s2161_s25  }
   0x9   : > { %2133 = sst [smem:[#allocation13_spill]] %s1715_s27  ;;  %s1211_s30 = sadd.s32 4294967294, %s1719_s28  }
   0xa   : > { %2134 = sst [smem:[#allocation14_spill]] %s1719_s28  ;;  %s1827_s14 = sadd.s32 1, %s1719_s28  }
   0xb   : > { %2135 = sst [smem:[#allocation15_spill]] %s1827_s14  ;;  %s256_s15 = sadd.s32 1, %s1715_s27 }
   0xc   : > { %s253_s16 = ssub.s32 %s1719_s28, %s1827_s14  ;;  %p266_p0 = scmp.ne.s32.totalorder %s1715_s27, %s1711_s26 }
   0xd   : > { %p254_p1 = scmp.eq.s32.totalorder %s253_s16, 0  ;;  %p267_p2 = scmp.eq.s32.totalorder %s1823_s29, 1 }
   0xe   : > { %p272_p3 = scmp.ne.s32.totalorder %s1711_s26, %s1707_s25  ;;  %p273_p4 = scmp.eq.s32.totalorder %s1211_s30, 1 }
   0xf   : > { %s1838_s17 = scalar_select %p254_p1, %s1715_s27, %s256_s15  }
  0x10   : > { %p1840_p5 = por %p267_p2, %p266_p0  ;;  %p1844_p6 = por %p273_p4, %p272_p3 }
  0x11   : > { %2136 = sst [smem:[#allocation16_spill]] %s1838_s17  ;;  %p1212_p7 = scmp.ge.s32.totalorder %s1719_s28, 1 }
  0x12   : > { %s2137_s18 = scalar_select %p1840_p5, 1, 0 }
  0x13   : > { %s2139_s19 = scalar_select %p1844_p6, 1, 0 }
  0x14   : > { %2138 = sst [smem:[#allocation17_spill]] %s2137_s18  ;;  %p358_p8 = scmp.lt.s32.totalorder %s1719_s28, 3 }
  0x15   : > { %2140 = sst [smem:[#allocation18_spill]] %s2139_s19  ;;  %p2123_p9 = scmp.eq.s32.totalorder %s1823_s29, 0 }
  0x16   : > { %p1851_p10 = pnand %p1212_p7, %p358_p8  ;;  %s1721_s21 = smov [#allocation5]  }
  0x17   : > { %s386_s22 = sshll.u32 %s1721_s21, 4  ;;  %s1722_s24 = smov [#allocation2]   ;;  %s1857_s22 = int_to_ptr.vmem [resolvable:$true] %s386_s22 }
  0x18   : > { %s2141_s20 = scalar_select %p1851_p10, 1, 0 }
  0x19   : > { %p1496_p11 = pneg %p1851_p10  ;;  %s370_s30 = sshll.u32 %s1722_s24, 4  ;;  %s1865_s30 = int_to_ptr.vmem [resolvable:$true] %s370_s30 }
  0x1a   : > { %s1723_s15 = smov [#allocation7]   ;;  %s1565_s14 = scalar_lea.hbm %s2108_s4, 8192 }
  0x1b   : > { %p1861_p12 = pnand %p2123_p9, %p1496_p11  ;;  %s1867_s16 = sshll.u32 %s1723_s15, 4  ;;  %s409_s16 = int_to_ptr.vmem [resolvable:$true] %s1867_s16 }
  0x1c   : > { %p1566_p13 = scmp.ne.s32.totalorder %s2108_s4, %s1565_s14  ;;  %p1572_p3 = scmp.lt.u32.totalorder %s1565_s14, %s2108_s4 }
  0x1d   : > { %p1877_p0 = pneg %p1861_p12 }
  0x1f   : > { %p1568_p1 = pnand %p1877_p0, %p1566_p13 }
  0x21   : > { %p1569_p2 = pneg %p1568_p1 }
  0x23   : > { %p1574_p4 = pnand %p1572_p3, %p1569_p2 }
  0x25   : > { %1577 = shalt.err (!%p1574_p4)
}
  0x26   : > { %s1578_s27 = scalar_lea.vmem %s1857_s22, 8192  ;;  %p1586_p9 = scmp.lt.s32.totalorder %s1857_s22, %s1857_s22 }
  0x27   : > { %p1579_p7 = scmp.ne.s32.totalorder %s1857_s22, %s1578_s27  ;;  %p1587_p6 = scmp.lt.s32.totalorder %s1578_s27, %s1578_s27 }
  0x29   : > { %p1581_p8 = pnand %p1579_p7, %p1877_p0  ;;  %p1588_p13 = por %p1587_p6, %p1586_p9 }
  0x2b   : > { %p1582_p11 = pneg %p1581_p8 }
  0x2d   : > { %p1589_p1 = pnand %p1588_p13, %p1582_p11 }
  0x2f   : > { %1592 = shalt.err (!%p1589_p1)
}
  0x30   : > { %s1724_s17 = smov 256   ;;  %s1725_s14 = smov 16  }
  0x31   : > { %1502 = dma.hbm_to_vmem [thread:$0]  (!%p1861_p12), %s2108_s4, 8192, %s1857_s22, [#allocation6], %s1724_s17, %s1724_s17, %s1725_s14  }
  0x32   : > { %s1593_s28 = scalar_lea.hbm %s2106_s2, 4096 }
  0x33   : > { %p1594_p6 = scmp.ne.s32.totalorder %s2106_s2, %s1593_s28  ;;  %p1600_p3 = scmp.lt.u32.totalorder %s1593_s28, %s2106_s2 }
  0x35   : > { %p1596_p9 = pnand %p1594_p6, %p1877_p0 }
  0x37   : > { %p1597_p2 = pneg %p1596_p9 }
  0x39   : > { %p1602_p4 = pnand %p1600_p3, %p1597_p2 }
  0x3b   : > { %1605 = shalt.err (!%p1602_p4)
}
  0x3c   : > { %s1606_s22 = scalar_lea.vmem %s1865_s30, 4096  ;;  %p1614_p13 = scmp.lt.s32.totalorder %s1865_s30, %s1865_s30 }
  0x3d   : > { %p1607_p7 = scmp.ne.s32.totalorder %s1865_s30, %s1606_s22  ;;  %p1615_p1 = scmp.lt.s32.totalorder %s1606_s22, %s1606_s22 }
  0x3f   : > { %p1609_p8 = pnand %p1607_p7, %p1877_p0  ;;  %p1616_p6 = por %p1615_p1, %p1614_p13 }
  0x41   : > { %p1610_p11 = pneg %p1609_p8 }
  0x43   : > { %p1617_p9 = pnand %p1616_p6, %p1610_p11 }
  0x45   : > { %1620 = shalt.err (!%p1617_p9)
}
  0x46   : > { %1499 = dma.hbm_to_vmem [thread:$0]  (!%p1861_p12), %s2106_s2, 4096, %s1865_s30, [#allocation3], %s1724_s17, %s1724_s17, %s1725_s14  }
  0x47   : > { %s1621_s19 = scalar_lea.hbm %s2112_s8, 2048 }
  0x48   : > { %p1622_p2 = scmp.ne.s32.totalorder %s2112_s8, %s1621_s19  ;;  %p1628_p7 = scmp.lt.u32.totalorder %s1621_s19, %s2112_s8 }
  0x4a   : > { %p1624_p3 = pnand %p1622_p2, %p1877_p0 }
  0x4c   : > { %p1625_p4 = pneg %p1624_p3 }
  0x4e   : > { %p1630_p8 = pnand %p1628_p7, %p1625_p4 }
  0x50   : > { %1633 = shalt.err (!%p1630_p8)
}
  0x51   : > { %s1634_s22 = scalar_lea.vmem %s409_s16, 2048  ;;  %p1642_p6 = scmp.lt.s32.totalorder %s409_s16, %s409_s16 }
  0x52   : > { %p1635_p11 = scmp.ne.s32.totalorder %s409_s16, %s1634_s22  ;;  %p1643_p9 = scmp.lt.s32.totalorder %s1634_s22, %s1634_s22 }
  0x54   : > { %p1637_p13 = pnand %p1635_p11, %p1877_p0  ;;  %p1644_p5 = por %p1643_p9, %p1642_p6 }
  0x56   : > { %p1638_p1 = pneg %p1637_p13 }
  0x58   : > { %p1645_p10 = pnand %p1644_p5, %p1638_p1 }
  0x5a   : > { %1648 = shalt.err (!%p1645_p10)
}
  0x5b   : > { %s1726_s30 = smov 128   ;;  %s1727_s17 = smov 8  }
  0x5c   : > { %1505 = dma.hbm_to_vmem [thread:$0]  (!%p1861_p12), %s2112_s8, 2048, %s409_s16, [#allocation6], %s1726_s30, %s1726_s30, %s1727_s17  }
  0x5d   : > { %p2144_p2 = scmp.ne.s32.totalorder %s2141_s20, 0 }
  0x5e   : > { %p2145_p3 = scmp.eq.s32.totalorder (!%p2144_p2), %s1823_s29, 0 }
  0x5f   : > { %441 = sbr.rel (%p2144_p2) target bundleno = 1066 (0x42a), region = 60 }
  0x66   : > { %1694 = dma.done.wait (%p2145_p3), [#allocation3], 4096   ;;  %p2146_p0 = pmov %p2145_p3 }
  0x68   : > { %1696 = vsyncadd (%p2146_p0), [#allocation3], 4294963200  ;;  %p2147_p5 = pmov %p2146_p0 }
  0x69   : > { %p2148_p10 = pmov %p2146_p0 }
  0x6a   : > { %1698 = dma.done.wait (%p2147_p5), [#allocation6], 10240  }
  0x6b   : > { %1700 = vsyncadd (%p2148_p10), [#allocation6], 4294957056  ;;  %v1728_v0 = vmov 0.0   ;;  %v531_v1 = vld [vmem:[#allocation2 + $0x8] sm:$0xff]  ;;  %v533_v2 = vld [vmem:[#allocation2 + $0x18] sm:$0xff]  ;;  %p508_p12 = scmp.lt.s32.totalorder %s1823_s29, 1 }
  0x6c   : > { %638 = vmatprep.mubr.f32.mxu0 %v1728_v0  ;;  %v530_v3 = vld [vmem:[#allocation2] sm:$0xff]  ;;  %v1338_v4 = vpack.c.bf16 %v533_v2, %v531_v1  ;;  %v532_v5 = vld [vmem:[#allocation2 + $0x10] sm:$0xff]  ;;  %v535_v6 = vld [vmem:[#allocation2 + $0x28] sm:$0xff]  ;;  %vm1730_vm2 = vmmov 0   ;;  %s2149_s21 = sld [smem:[#allocation19_spill]]  ;;  %s2150_s24 = sld [smem:[#allocation17_spill]] }
  0x6d   : > { %v537_v7 = vld [vmem:[#allocation2 + $0x38] sm:$0xff]  ;;  %v1340_v8 = vpack.c.bf16 %v532_v5, %v530_v3  ;;  %v534_v10 = vld [vmem:[#allocation2 + $0x20] sm:$0xff]  ;;  %v536_v11 = vld [vmem:[#allocation2 + $0x30] sm:$0xff]  ;;  %s509_s25 = scalar_select %p508_p12, %s1823_s29, 1 }
  0x6e   : > { %v1342_v9 = vpack.c.bf16 %v537_v7, %v535_v6  ;;  %v539_v12 = vld [vmem:[#allocation2 + $0x48] sm:$0xff]  ;;  %1339 = vmatprep.subr.bf16.mxu0 %v1338_v4  ;;  %v541_v13 = vld [vmem:[#allocation2 + $0x58] sm:$0xff]  ;;  %v1344_v14 = vpack.c.bf16 %v536_v11, %v534_v10  ;;  %v538_v16 = vld [vmem:[#allocation2 + $0x40] sm:$0xff]  ;;  %s487_s15 = sand.u32 1, %s1711_s26   ;;  %s1231_s22 = sshll.u32 %s1823_s29, 7 }
  0x6f   : > { %1341 = vmatpush1.bf16.msra.mxu0 %v1340_v8  ;;  %v1346_v15 = vpack.c.bf16 %v541_v13, %v539_v12  ;;  %v540_v17 = vld [vmem:[#allocation2 + $0x50] sm:$0xff]  ;;  %v543_v18 = vld [vmem:[#allocation2 + $0x68] sm:$0xff]  ;;  %v545_v19 = vld [vmem:[#allocation2 + $0x78] sm:$0xff]  ;;  %s1955_s20 = sshll.u32 %s509_s25, 3  ;;  %s1731_s29 = smov [#allocation8]  }
  0x70   : > { %1343 = vmatprep.subr.bf16.mxu0 %v1342_v9  ;;  %v1348_v20 = vpack.c.bf16 %v540_v17, %v538_v16  ;;  %v1350_v21 = vpack.c.bf16 %v545_v19, %v543_v18  ;;  %v542_v22 = vld [vmem:[#allocation2 + $0x60] sm:$0xff]  ;;  %v544_v23 = vld [vmem:[#allocation2 + $0x70] sm:$0xff]  ;;  %v547_v24 = vld [vmem:[#allocation2 + $0x88] sm:$0xff]  ;;  %s511_s10 = scalar_lea.vmem %s2104_s0, %s1955_s20  ;;  %s519_s27 = scalar_lea.vmem %s2115_s11, %s1955_s20 }
  0x71   : > { %v549_v25 = vld [vmem:[#allocation2 + $0x98] sm:$0xff]  ;;  %v546_v26 = vld [vmem:[#allocation2 + $0x80] sm:$0xff]  ;;  %v548_v27 = vld [vmem:[#allocation2 + $0x90] sm:$0xff]  ;;  %v1352_v31 = vpack.c.bf16 %v544_v23, %v542_v22  ;;  %s523_s17 = scalar_lea.vmem %s2116_s12, %s1955_s20  ;;  %s515_s25 = scalar_lea.vmem %s2105_s1, %s1955_s20 }
  0x72   : > { %v652_v28 = vld [vmem:[#allocation5 + $0x8] sm:$0xff]  ;;  %v654_v29 = vld [vmem:[#allocation5 + $0x18] sm:$0xff]  ;;  %v651_v30 = vld [vmem:[#allocation5] sm:$0xff]  ;;  %v1354_v36 = vpack.c.bf16 %v549_v25, %v547_v24  ;;  %v1356_v46 = vpack.c.bf16 %v548_v27, %v546_v26  ;;  %p2153_p7 = scmp.ne.s32.totalorder %s2150_s24, 0  ;;  %s1653_s28 = sshll.u32 %s1731_s29, 4  ;;  %s1654_s28 = int_to_ptr.vmem [resolvable:$false] %s1653_s28 }
  0x73   : > { %1345 = vmatpush1.bf16.msra.mxu0 %v1344_v14  ;;  %v1370_v32 = vpack.c.bf16 %v654_v29, %v652_v28  ;;  %v653_v33 = vld [vmem:[#allocation5 + $0x10] sm:$0xff]  ;;  %v656_v34 = vld [vmem:[#allocation5 + $0x28] sm:$0xff]  ;;  %v658_v35 = vld [vmem:[#allocation5 + $0x38] sm:$0xff]  ;;  %s1655_s18 = scalar_lea.vmem %s1654_s28, 256 }
  0x74   : > { %1347 = vmatprep.subr.bf16.mxu0 %v1346_v15  ;;  %v1372_v37 = vpack.c.bf16 %v653_v33, %v651_v30  ;;  %v1374_v38 = vpack.c.bf16 %v658_v35, %v656_v34  ;;  %v655_v39 = vld [vmem:[#allocation5 + $0x20] sm:$0xff]  ;;  %v657_v40 = vld [vmem:[#allocation5 + $0x30] sm:$0xff]  ;;  %v660_v41 = vld [vmem:[#allocation5 + $0x48] sm:$0xff] }
  0x75   : > { %v551_v42 = vld [vmem:[#allocation2 + $0xa8] sm:$0xff]  ;;  %v553_v43 = vld [vmem:[#allocation2 + $0xb8] sm:$0xff]  ;;  %1371 = vmatprep.subr.bf16.mxu1 %v1370_v32  ;;  %v1376_v45 = vpack.c.bf16 %v657_v40, %v655_v39  ;;  %v550_v47 = vld [vmem:[#allocation2 + $0xa0] sm:$0xff] }
  0x76   : > { %v662_v44 = vld [vmem:[#allocation5 + $0x58] sm:$0xff]  ;;  %1373 = vmatpush1.bf16.msra.mxu1 %v1372_v37  ;;  %v659_v49 = vld [vmem:[#allocation5 + $0x40] sm:$0xff]  ;;  %v661_v50 = vld [vmem:[#allocation5 + $0x50] sm:$0xff]  ;;  %v1358_v51 = vpack.c.bf16 %v553_v43, %v551_v42 }
  0x77   : > { %1349 = vmatpush1.bf16.msra.mxu0 %v1348_v20  ;;  %1375 = vmatprep.subr.bf16.mxu1 %v1374_v38  ;;  %v1378_v48 = vpack.c.bf16 %v662_v44, %v660_v41  ;;  %v552_v52 = vld [vmem:[#allocation2 + $0xb0] sm:$0xff]  ;;  %v664_v53 = vld [vmem:[#allocation5 + $0x68] sm:$0xff]  ;;  %v666_v54 = vld [vmem:[#allocation5 + $0x78] sm:$0xff]  ;;  %v1380_v57 = vpack.c.bf16 %v661_v50, %v659_v49 }
  0x78   : > { %1351 = vmatprep.subr.bf16.mxu0 %v1350_v21  ;;  %v555_v55 = vld [vmem:[#allocation2 + $0xc8] sm:$0xff]  ;;  %v557_v56 = vld [vmem:[#allocation2 + $0xd8] sm:$0xff]  ;;  %v1360_v58 = vpack.c.bf16 %v552_v52, %v550_v47  ;;  %v554_v59 = vld [vmem:[#allocation2 + $0xc0] sm:$0xff]  ;;  %v1382_v60 = vpack.c.bf16 %v666_v54, %v664_v53 }
  0x79   : > { %v663_v61 = vld [vmem:[#allocation5 + $0x60] sm:$0xff]  ;;  %v665_v62 = vld [vmem:[#allocation5 + $0x70] sm:$0xff]  ;;  %v1362_v63 = vpack.c.bf16 %v557_v56, %v555_v55  ;;  %v668_v2 = vld [vmem:[#allocation5 + $0x88] sm:$0xff] }
  0x7a   : > { %1377 = vmatpush1.bf16.msra.mxu1 %v1376_v45  ;;  %v556_v1 = vld [vmem:[#allocation2 + $0xd0] sm:$0xff]  ;;  %v670_v3 = vld [vmem:[#allocation5 + $0x98] sm:$0xff]  ;;  %v559_v4 = vld [vmem:[#allocation2 + $0xe8] sm:$0xff]  ;;  %v1384_v6 = vpack.c.bf16 %v665_v62, %v663_v61 }
  0x7b   : > { %1353 = vmatpush1.bf16.msra.mxu0 %v1352_v31  ;;  %1379 = vmatprep.subr.bf16.mxu1 %v1378_v48  ;;  %v561_v5 = vld [vmem:[#allocation2 + $0xf8] sm:$0xff]  ;;  %v1364_v7 = vpack.c.bf16 %v556_v1, %v554_v59  ;;  %v558_v8 = vld [vmem:[#allocation2 + $0xe0] sm:$0xff]  ;;  %v1386_v9 = vpack.c.bf16 %v670_v3, %v668_v2  ;;  %v669_v11 = vld [vmem:[#allocation5 + $0x90] sm:$0xff] }
  0x7c   : > { %1355 = vmatprep.subr.bf16.mxu0 %v1354_v36  ;;  %v667_v10 = vld [vmem:[#allocation5 + $0x80] sm:$0xff]  ;;  %v1366_v12 = vpack.c.bf16 %v561_v5, %v559_v4  ;;  %v560_v13 = vld [vmem:[#allocation2 + $0xf0] sm:$0xff]  ;;  %v672_v14 = vld [vmem:[#allocation5 + $0xa8] sm:$0xff] }
  0x7d   : > { %v674_v15 = vld [vmem:[#allocation5 + $0xb8] sm:$0xff]  ;;  %v1388_v16 = vpack.c.bf16 %v669_v11, %v667_v10  ;;  %v1368_v17 = vpack.c.bf16 %v560_v13, %v558_v8  ;;  %v671_v19 = vld [vmem:[#allocation5 + $0xa0] sm:$0xff]  ;;  %v673_v20 = vld [vmem:[#allocation5 + $0xb0] sm:$0xff] }
  0x7e   : > { %1381 = vmatpush1.bf16.msra.mxu1 %v1380_v57  ;;  %v1390_v18 = vpack.c.bf16 %v674_v15, %v672_v14  ;;  %v676_v21 = vld [vmem:[#allocation5 + $0xc8] sm:$0xff]  ;;  %v678_v22 = vld [vmem:[#allocation5 + $0xd8] sm:$0xff]  ;;  %v1392_v23 = vpack.c.bf16 %v673_v20, %v671_v19  ;;  %v528_v24 = vld [vmem:[%s511_s10] sm:$0xff]  ;;  %s527_s10 = scalar_lea.vmem %s2117_s13, %s1955_s20 }
  0x7f   : > { %1357 = vmatpush1.bf16.msra.mxu0 %v1356_v46  ;;  %1383 = vmatprep.subr.bf16.mxu1 %v1382_v60  ;;  %v1394_v25 = vpack.c.bf16 %v678_v22, %v676_v21  ;;  %v675_v26 = vld [vmem:[#allocation5 + $0xc0] sm:$0xff]  ;;  %v677_v27 = vld [vmem:[#allocation5 + $0xd0] sm:$0xff]  ;;  %v680_v28 = vld [vmem:[#allocation5 + $0xe8] sm:$0xff] }
  0x80   : > { %1359 = vmatprep.subr.bf16.mxu0 %v1358_v51  ;;  %v682_v29 = vld [vmem:[#allocation5 + $0xf8] sm:$0xff]  ;;  %v1396_v30 = vpack.c.bf16 %v677_v27, %v675_v26  ;;  %v679_v32 = vld [vmem:[#allocation5 + $0xe0] sm:$0xff]  ;;  %v681_v33 = vld [vmem:[#allocation5 + $0xf0] sm:$0xff]  ;;  %v564_v27 = vlaneseq }
  0x81   : > { %v1398_v31 = vpack.c.bf16 %v682_v29, %v680_v28  ;;  %v684_v34 = vld [vmem:[#allocation5 + $0x108] sm:$0xff]  ;;  %v686_v35 = vld [vmem:[#allocation5 + $0x118] sm:$0xff]  ;;  %v1400_v36 = vpack.c.bf16 %v681_v33, %v679_v32  ;;  %v683_v38 = vld [vmem:[#allocation5 + $0x100] sm:$0xff] }
  0x82   : > { %1385 = vmatpush1.bf16.msra.mxu1 %v1384_v6  ;;  %v1402_v37 = vpack.c.bf16 %v686_v35, %v684_v34  ;;  %v685_v39 = vld [vmem:[#allocation5 + $0x110] sm:$0xff]  ;;  %v688_v40 = vld [vmem:[#allocation5 + $0x128] sm:$0xff]  ;;  %v690_v41 = vld [vmem:[#allocation5 + $0x138] sm:$0xff]  ;;  %v565_v28 = vshrl.u32 %v564_v27, 7 }
  0x83   : > { %1361 = vmatpush1.bf16.msra.mxu0 %v1360_v58  ;;  %1387 = vmatprep.subr.bf16.mxu1 %v1386_v9  ;;  %v1404_v42 = vpack.c.bf16 %v685_v39, %v683_v38  ;;  %v1406_v43 = vpack.c.bf16 %v690_v41, %v688_v40  ;;  %v687_v44 = vld [vmem:[#allocation5 + $0x120] sm:$0xff]  ;;  %v689_v45 = vld [vmem:[#allocation5 + $0x130] sm:$0xff]  ;;  %v692_v46 = vld [vmem:[#allocation5 + $0x148] sm:$0xff] }
  0x84   : > { %1363 = vmatprep.subr.bf16.mxu0 %v1362_v63  ;;  %v694_v47 = vld [vmem:[#allocation5 + $0x158] sm:$0xff]  ;;  %v1408_v48 = vpack.c.bf16 %v689_v45, %v687_v44  ;;  %v691_v50 = vld [vmem:[#allocation5 + $0x140] sm:$0xff]  ;;  %v693_v51 = vld [vmem:[#allocation5 + $0x150] sm:$0xff]  ;;  %v566_v29 = vsub.s32 0, %v565_v28 }
  0x85   : > { %v1410_v49 = vpack.c.bf16 %v694_v47, %v692_v46  ;;  %v696_v52 = vld [vmem:[#allocation5 + $0x168] sm:$0xff]  ;;  %v698_v53 = vld [vmem:[#allocation5 + $0x178] sm:$0xff]  ;;  %v1412_v54 = vpack.c.bf16 %v693_v51, %v691_v50  ;;  %v695_v56 = vld [vmem:[#allocation5 + $0x160] sm:$0xff] }
  0x86   : > { %1389 = vmatpush1.bf16.msra.mxu1 %v1388_v16  ;;  %v1414_v55 = vpack.c.bf16 %v698_v53, %v696_v52  ;;  %v697_v57 = vld [vmem:[#allocation5 + $0x170] sm:$0xff]  ;;  %v700_v58 = vld [vmem:[#allocation5 + $0x188] sm:$0xff]  ;;  %v702_v59 = vld [vmem:[#allocation5 + $0x198] sm:$0xff] }
  0x87   : > { %1365 = vmatpush1.bf16.msra.mxu0 %v1364_v7  ;;  %1391 = vmatprep.subr.bf16.mxu1 %v1390_v18  ;;  %v1416_v60 = vpack.c.bf16 %v697_v57, %v695_v56  ;;  %v1418_v61 = vpack.c.bf16 %v702_v59, %v700_v58  ;;  %v699_v62 = vld [vmem:[#allocation5 + $0x180] sm:$0xff]  ;;  %v701_v63 = vld [vmem:[#allocation5 + $0x190] sm:$0xff]  ;;  %v704_v1 = vld [vmem:[#allocation5 + $0x1a8] sm:$0xff] }
  0x88   : > { %1367 = vmatprep.subr.bf16.mxu0 %v1366_v12  ;;  %v706_v2 = vld [vmem:[#allocation5 + $0x1b8] sm:$0xff]  ;;  %v1420_v3 = vpack.c.bf16 %v701_v63, %v699_v62  ;;  %v703_v5 = vld [vmem:[#allocation5 + $0x1a0] sm:$0xff]  ;;  %v705_v6 = vld [vmem:[#allocation5 + $0x1b0] sm:$0xff] }
  0x89   : > { %v1422_v4 = vpack.c.bf16 %v706_v2, %v704_v1  ;;  %v1424_v7 = vpack.c.bf16 %v705_v6, %v703_v5  ;;  %v708_v8 = vld [vmem:[#allocation5 + $0x1c8] sm:$0xff]  ;;  %v710_v9 = vld [vmem:[#allocation5 + $0x1d8] sm:$0xff]  ;;  %v707_v11 = vld [vmem:[#allocation5 + $0x1c0] sm:$0xff] }
  0x8a   : > { %1393 = vmatpush1.bf16.msra.mxu1 %v1392_v23  ;;  %v1426_v10 = vpack.c.bf16 %v710_v9, %v708_v8  ;;  %v709_v12 = vld [vmem:[#allocation5 + $0x1d0] sm:$0xff]  ;;  %v712_v14 = vld [vmem:[#allocation5 + $0x1e8] sm:$0xff]  ;;  %v714_v15 = vld [vmem:[#allocation5 + $0x1f8] sm:$0xff]  ;;  %v1729_v23 = vmov 0.0|0.0  }
  0x8b   : > { %1369 = vmatpush1.bf16.msra.mxu0 %v1368_v17  ;;  %1395 = vmatprep.subr.bf16.mxu1 %v1394_v25  ;;  %v1428_v13 = vpack.c.bf16 %v709_v12, %v707_v11  ;;  %v1430_v16 = vpack.c.bf16 %v714_v15, %v712_v14  ;;  %v711_v17 = vld [vmem:[#allocation5 + $0x1e0] sm:$0xff]  ;;  %v713_v18 = vld [vmem:[#allocation5 + $0x1f0] sm:$0xff]  ;;  %v804_v21 = vld [vmem:[%s2110_s6 + $0x8] sm:$0xff] }
  0x8c   : > { %v1432_v19 = vpack.c.bf16 %v713_v18, %v711_v17  ;;  %v803_v20 = vld [vmem:[%s2110_s6] sm:$0xff]  ;;  %v805_v22 = vld [vmem:[%s2110_s6 + $0x10] sm:$0xff]  ;;  %1434 = vmatprep.subr.bf16.mxu0 %v1729_v23  ;;  %v806_v25 = vld [vmem:[%s2110_s6 + $0x18] sm:$0xff] }
  0x8d   : > { %v1438_v26 = vpack.c.bf16 %v806_v25, %v805_v22  ;;  %v809_v45 = vld [vmem:[%s2110_s6 + $0x30] sm:$0xff]  ;;  %v810_v46 = vld [vmem:[%s2110_s6 + $0x38] sm:$0xff]  ;;  %v529_v6 = vld [vmem:[%s515_s25] sm:$0xff]  ;;  %s2151_s25 = sld [smem:[#allocation20_spill]] }
  0x8e   : > { %639 = vmatmul.mubr.f32.vlgmr.msra.gmra.mrb[0].mxu0 %v528_v24  ;;  %1397 = vmatpush1.bf16.msra.mxu1 %v1396_v30  ;;  %v1435_v24 = vpack.c.bf16 %v804_v21, %v803_v20  ;;  %v562_v30 = vld [vmem:[%s2107_s3] sm:$0x3]  ;;  %v1444_v47 = vpack.c.bf16 %v810_v46, %v809_v45  ;;  %v813_v51 = vld [vmem:[%s2110_s6 + $0x50] sm:$0xff]  ;;  %v814_v52 = vld [vmem:[%s2110_s6 + $0x58] sm:$0xff] }
  0x8f   : > { %1399 = vmatprep.subr.bf16.mxu1 %v1398_v31  ;;  %v570_v31 = vsub.s32 1, %v565_v28  ;;  %v567_v32 = vrot.slane %v562_v30, %v566_v29  ;;  %v1450_v53 = vpack.c.bf16 %v814_v52, %v813_v51  ;;  %1300 = vmatprep.mubr.msk.f32.mxu0 %vm1730_vm2, %v1728_v0  ;;  %v817_v57 = vld [vmem:[%s2110_s6 + $0x70] sm:$0xff]  ;;  %v818_v58 = vld [vmem:[%s2110_s6 + $0x78] sm:$0xff]  ;;  %v900_v8 = vld [vmem:[#allocation7 + $0x8] sm:$0xff] }
  0x90   : > { %1436 = vmatpush3.bf16.msra.mxu0 %v1435_v24  ;;  %v1456_v59 = vpack.c.bf16 %v818_v58, %v817_v57  ;;  %v902_v14 = vld [vmem:[#allocation7 + $0x18] sm:$0xff]  ;;  %v904_v17 = vld [vmem:[#allocation7 + $0x28] sm:$0xff]  ;;  %v907_v22 = vld [vmem:[#allocation7 + $0x40] sm:$0xff] }
  0x91   : > { %1437 = vmatprep.subr.bf16.mxu0 %v1729_v23  ;;  %v571_v33 = vrot.slane %v562_v30, %v570_v31  ;;  %v906_v20 = vld [vmem:[#allocation7 + $0x38] sm:$0xff]  ;;  %v908_v24 = vld [vmem:[#allocation7 + $0x48] sm:$0xff]  ;;  %v911_v28 = vld [vmem:[#allocation7 + $0x60] sm:$0xff] }
  0x92   : > { %1401 = vmatpush1.bf16.msra.mxu1 %v1400_v36  ;;  %v1471_v25 = vpack.c.bf16 %v908_v24, %v907_v22 }
  0x93   : > { %1403 = vmatprep.subr.bf16.mxu1 %v1402_v37  ;;  %s2152_s23 = smov %s2151_s25  ;;  %s2062_s16 = scalar_lea.hbm %s2151_s25, %s1231_s22 }
  0x94   : > { %1439 = vmatpush3.bf16.msra.mxu0 %v1438_v26  ;;  %v910_v26 = vld [vmem:[#allocation7 + $0x58] sm:$0xff] }
  0x95   : > { %1440 = vmatprep.subr.bf16.mxu0 %v1729_v23 }
  0x96   : > { %1405 = vmatpush1.bf16.msra.mxu1 %v1404_v42  ;;  %v807_v42 = vld [vmem:[%s2110_s6 + $0x20] sm:$0xff] }
  0x97   : > { %1407 = vmatprep.subr.bf16.mxu1 %v1406_v43  ;;  %v808_v43 = vld [vmem:[%s2110_s6 + $0x28] sm:$0xff] }
  0x98   : > { %v1441_v44 = vpack.c.bf16 %v808_v43, %v807_v42 }
  0x9a   : > { %1409 = vmatpush1.bf16.msra.mxu1 %v1408_v48  ;;  %1442 = vmatpush3.bf16.msra.mxu0 %v1441_v44  ;;  %v811_v48 = vld [vmem:[%s2110_s6 + $0x40] sm:$0xff] }
  0x9b   : > { %1411 = vmatprep.subr.bf16.mxu1 %v1410_v49  ;;  %1443 = vmatprep.subr.bf16.mxu0 %v1729_v23  ;;  %v812_v49 = vld [vmem:[%s2110_s6 + $0x48] sm:$0xff] }
  0x9c   : > { %v1447_v50 = vpack.c.bf16 %v812_v49, %v811_v48 }
  0x9e   : > { %1413 = vmatpush1.bf16.msra.mxu1 %v1412_v54  ;;  %1445 = vmatpush3.bf16.msra.mxu0 %v1444_v47  ;;  %v815_v54 = vld [vmem:[%s2110_s6 + $0x60] sm:$0xff] }
  0x9f   : > { %1415 = vmatprep.subr.bf16.mxu1 %v1414_v55  ;;  %1446 = vmatprep.subr.bf16.mxu0 %v1729_v23  ;;  %v816_v55 = vld [vmem:[%s2110_s6 + $0x68] sm:$0xff] }
  0xa0   : > { %v1453_v56 = vpack.c.bf16 %v816_v55, %v815_v54 }
  0xa2   : > { %1417 = vmatpush1.bf16.msra.mxu1 %v1416_v60  ;;  %1448 = vmatpush3.bf16.msra.mxu0 %v1447_v50  ;;  %v715_v60 = vld [vmem:[%s2109_s5] sm:$0x3] }
  0xa3   : > { %1419 = vmatprep.subr.bf16.mxu1 %v1418_v61  ;;  %1449 = vmatprep.subr.bf16.mxu0 %v1729_v23  ;;  %v720_v61 = vrot.slane %v715_v60, %v566_v29  ;;  %v724_v62 = vrot.slane %v715_v60, %v570_v31  ;;  %v912_v29 = vld [vmem:[#allocation7 + $0x68] sm:$0xff]  ;;  %v913_v31 = vld [vmem:[#allocation7 + $0x70] sm:$0xff] }
  0xa4   : > { %v1477_v30 = vpack.c.bf16 %v912_v29, %v911_v28 }
  0xa6   : > { %1421 = vmatpush1.bf16.msra.mxu1 %v1420_v3  ;;  %1451 = vmatpush3.bf16.msra.mxu0 %v1450_v53 }
  0xa7   : > { %1423 = vmatprep.subr.bf16.mxu1 %v1422_v4  ;;  %1452 = vmatprep.subr.bf16.mxu0 %v1729_v23 }
  0xaa   : > { %1425 = vmatpush1.bf16.msra.mxu1 %v1424_v7  ;;  %1454 = vmatpush3.bf16.msra.mxu0 %v1453_v56  ;;  %v899_v7 = vld [vmem:[#allocation7] sm:$0xff] }
  0xab   : > { %1427 = vmatprep.subr.bf16.mxu1 %v1426_v10  ;;  %1455 = vmatprep.subr.bf16.mxu0 %v1729_v23  ;;  %v1459_v11 = vpack.c.bf16 %v900_v8, %v899_v7 }
  0xae   : > { %1429 = vmatpush1.bf16.msra.mxu1 %v1428_v13  ;;  %1457 = vmatpush3.bf16.msra.mxu0 %v1456_v59  ;;  %v901_v13 = vld [vmem:[#allocation7 + $0x10] sm:$0xff] }
  0xaf   : > { %1431 = vmatprep.subr.bf16.mxu1 %v1430_v16  ;;  %1458 = vmatprep.subr.bf16.mxu0 %v1729_v23  ;;  %v1462_v15 = vpack.c.bf16 %v902_v14, %v901_v13  ;;  %v903_v16 = vld [vmem:[#allocation7 + $0x20] sm:$0xff] }
  0xb0   : > { %v1465_v18 = vpack.c.bf16 %v904_v17, %v903_v16 }
  0xb2   : > { %1433 = vmatpush1.bf16.msra.mxu1 %v1432_v19  ;;  %v905_v19 = vld [vmem:[#allocation7 + $0x30] sm:$0xff] }
  0xb3   : > { %v1468_v21 = vpack.c.bf16 %v906_v20, %v905_v19 }
 0x161   : > { %v640_v34 = vpop.f32.mrb[0].mxu0 }
 0x162   : > { %v641_v35 = vadd.f32 %v640_v34, %v567_v32  ;;  %v642_v36 = vpop.f32.mrb[1].mxu0  ;;  %v914_v32 = vld [vmem:[#allocation7 + $0x78] sm:$0xff]  ;;  %v1227_v34 = vld [vmem:[%s2111_s7] ss:$0 sm:$0xff] }
 0x163   : > { %v643_v37 = vadd.f32 %v642_v36, %v571_v33  ;;  %v1480_v33 = vpack.c.bf16 %v914_v32, %v913_v31 }
 0x164   : > { %v647_v38 = vmul.f32 0.1, %v641_v35  ;;  %vm645_vm1 = vcmp.ge.f32.partialorder %v641_v35, 0.0 }
 0x165   : > { %vm646_vm0 = vcmp.ge.f32.partialorder %v643_v37, 0.0  ;;  %v648_v39 = vmul.f32 0.1, %v643_v37 }
 0x166   : > { %v649_v41 = vsel %vm645_vm1, %v641_v35, %v647_v38 }
 0x167   : > { %v650_v40 = vsel %vm646_vm0, %v643_v37, %v648_v39 }
 0x168   : > { %791 = vmatprep.mubr.f32.mxu1 %v650_v40 }
 0x169   : > { %792 = vmatmul.mubr.f32.vlgmr.msra.gmra.mrb[0].mxu1 %v649_v41 }
 0x23c   : > { %v793_v63 = vpop.f32.mrb[0].mxu1 }
 0x23d   : > { %v794_v1 = vadd.f32 %v793_v63, %v720_v61  ;;  %v795_v2 = vpop.f32.mrb[1].mxu1 }
 0x23e   : > { %v796_v3 = vadd.f32 %v795_v2, %v724_v62 }
 0x23f   : > { %999 = vst [vmem:[%s519_s27] sm:$0xff] %v794_v1  ;;  %s1221_s27 = sshll.u32 %s487_s15, 3 }
 0x240   : > { %v798_v4 = vmul.f32 0.5, %v796_v3  ;;  %1000 = vst [vmem:[%s523_s17] sm:$0xff] %v796_v3  ;;  %s489_s30 = scalar_lea.vmem [#allocation8], %s1221_s27 }
 0x241   : > { %s1028_s17 = sshll.u32 %s489_s30, 4  ;;  %s2064_s17 = int_to_ptr.vmem [resolvable:$true] %s1028_s17 }
 0x242   : > { %v799_v5 = vmul.f32 1.442695, %v798_v4  ;;  %s1649_s20 = scalar_lea.vmem %s2064_s17, 128  ;;  %p1656_p13 = scmp.lt.s32.totalorder %s2064_s17, %s1654_s28 }
 0x243   : > { %p1650_p4 = scmp.ne.s32.totalorder %s2064_s17, %s1649_s20  ;;  %p1657_p1 = scmp.lt.s32.totalorder %s1655_s18, %s1649_s20 }
 0x244   : > { %1559 = vpow2.f32 %v799_v5 }
 0x245   : > { %p1651_p8 = pnand %p1650_p4, %p2153_p7  ;;  %p1658_p6 = por %p1657_p1, %p1656_p13 }
 0x247   : > { %p1652_p11 = pneg %p1651_p8 }
 0x249   : > { %p1659_p9 = pnand %p1658_p6, %p1652_p11 }
 0x24e   : > { %v1560_v9 = vpop.eup %1559 }
 0x24f   : > { %v801_v10 = vmul.f32 %v1560_v9, %v529_v6 }
 0x251   : > { %v802_v12 = vadd.f32 %v801_v10, %v794_v1 }
 0x253   : > { %1301 = vmatmul.mubr.f32.vlgmr.msra.gmra.mrb[2].mxu0 %v802_v12  ;;  %1001 = vst [vmem:[%s527_s10] sm:$0xff] %v802_v12  ;;  %s1003_s10 = scalar_lea.sflag [#allocation4], %s487_s15 }
 0x254   : > { %1460 = vmatpush3.bf16.msra.mxu0 %v1459_v11  ;;  %1335 = vmatprep.mubr.msk.f32.mxu0 %vm1730_vm2, %v1728_v0  ;;  %v909_v0 = vld [vmem:[#allocation7 + $0x50] sm:$0xff] }
 0x255   : > { %1461 = vmatprep.subr.bf16.mxu0 %v1729_v23  ;;  %v1474_v27 = vpack.c.bf16 %v910_v26, %v909_v0 }
 0x258   : > { %1463 = vmatpush3.bf16.msra.mxu0 %v1462_v15 }
 0x259   : > { %1464 = vmatprep.subr.bf16.mxu0 %v1729_v23 }
 0x25c   : > { %1466 = vmatpush3.bf16.msra.mxu0 %v1465_v18 }
 0x25d   : > { %1467 = vmatprep.subr.bf16.mxu0 %v1729_v23 }
 0x260   : > { %1469 = vmatpush3.bf16.msra.mxu0 %v1468_v21 }
 0x261   : > { %1470 = vmatprep.subr.bf16.mxu0 %v1729_v23 }
 0x264   : > { %1472 = vmatpush3.bf16.msra.mxu0 %v1471_v25 }
 0x265   : > { %1473 = vmatprep.subr.bf16.mxu0 %v1729_v23 }
 0x268   : > { %1475 = vmatpush3.bf16.msra.mxu0 %v1474_v27 }
 0x269   : > { %1476 = vmatprep.subr.bf16.mxu0 %v1729_v23 }
 0x26c   : > { %1478 = vmatpush3.bf16.msra.mxu0 %v1477_v30 }
 0x26d   : > { %1479 = vmatprep.subr.bf16.mxu0 %v1729_v23  ;;  %v1228_v23 = vld [vmem:[%s2149_s21] ss:$0 sm:$0xff] }
 0x270   : > { %1481 = vmatpush3.bf16.msra.mxu0 %v1480_v33 }
 0x326   : > { %v892_v35 = vpop.f32.mrb[2].mxu0 }
 0x327   : > { %v893_v36 = vadd.f32 %v1227_v34, %v892_v35  ;;  %v1302_v37 = vpop.f32.mrb[3].mxu0 }
 0x329   : > { %vm896_vm3 = vcmp.ge.f32.partialorder %v893_v36, 0.0  ;;  %v897_v38 = vmul.f32 0.1, %v893_v36 }
 0x32b   : > { %v898_v39 = vsel %vm896_vm3, %v893_v36, %v897_v38 }
 0x32c   : > { %1336 = vmatmul.mubr.f32.vlgmr.msra.gmra.mrb[4].mxu0 %v898_v39 }
 0x3ff   : > { %v988_v40 = vpop.f32.mrb[4].mxu0 }
 0x400   : > { %v989_v41 = vadd.f32 %v1228_v23, %v988_v40  ;;  %v1337_v42 = vpop.f32.mrb[5].mxu0 }
 0x402   : > { %v1229_v43 = vmul.f32 -1.442695, %v989_v41 }
 0x404   : > { %1561 = vpow2.f32 %v1229_v43 }
 0x40e   : > { %v1562_v44 = vpop.eup %1561 }
 0x40f   : > { %v995_v45 = vadd.f32 1.0, %v1562_v44 }
 0x411   : > { %1563 = vrcp.f32 %v995_v45 }
 0x41b   : > { %v1564_v46 = vpop.eup %1563 }
 0x41c   : > { %998 = vst [vmem:[%s489_s30] sm:$0xff] %v1564_v46 }
 0x41d   : > { %1662 = shalt.err (!%p1659_p9)
}
 0x41e   : > { %s1663_s19 = scalar_lea.hbm %s2062_s16, 128  ;;  %s1667_s27 = scalar_lea.hbm %s2152_s23, 256 }
 0x41f   : > { %p1664_p2 = scmp.ne.s32.totalorder %s2062_s16, %s1663_s19  ;;  %p1668_p5 = scmp.lt.u32.totalorder %s2062_s16, %s2152_s23 }
 0x420   : > { %p1669_p10 = scmp.lt.u32.totalorder %s1667_s27, %s1663_s19  ;;  %p1671_p4 = scmp.lt.u32.totalorder %s1663_s19, %s2062_s16 }
 0x421   : > { %p1665_p3 = pnand %p1664_p2, %p2153_p7 }
 0x422   : > { %p1670_p12 = por %p1669_p10, %p1668_p5 }
 0x423   : > { %p1666_p0 = pneg %p1665_p3 }
 0x424   : > { %p1672_p8 = por %p1671_p4, %p1670_p12 }
 0x426   : > { %p1673_p11 = pnand %p1672_p8, %p1666_p0 }
 0x428   : > { %1676 = shalt.err (!%p1673_p11)
}
 0x429   : > { %1494 = dma.vmem_to_hbm [thread:$0]  (%p2153_p7), %s2064_s17, 128, %s2062_s16, %s1003_s10  }
 0x42a PF: > { %s2154_s14 = sld [smem:[#allocation14_spill]]  ;;  %s2155_s9 = sld [smem:[#allocation12_spill]] }
 0x42b   : > { %s2156_s25 = sld [smem:[#allocation18_spill]] }
 0x430   : > { %p1516_p13 = scmp.ge.s32.totalorder %s2154_s14, 2  ;;  %s1049_s20 = sand.u32 1, %s2155_s9  }
 0x431   : > { %p2157_p1 = scmp.ne.s32.totalorder %s2156_s25, 0  ;;  %s1050_s29 = scalar_lea.sflag [#allocation4], %s1049_s20 }
 0x433   : > { %p1507_p6 = pnand %p1516_p13, %p2157_p1 }
 0x435   : > { %1702 = dma.done.wait (!%p1507_p6), %s1050_s29, 128  }
 0x436   : > { %1704 = vsyncadd (!%p1507_p6), %s1050_s29, 4294967168  ;;  %s2158_s28 = sld [smem:[#allocation15_spill]]  ;;  %s2159_s18 = sld [smem:[#allocation13_spill]] }
 0x437   : > { %s2160_s27 = sld [smem:[#allocation16_spill]]  ;;  %s2161_s25 = smov %s1711_s26 }
 0x43c   : > { %p26_p9 = scmp.ge.s32.totalorder %s2158_s28, 4   ;;  %s2162_s26 = smov %s2159_s18 }
 0x43e   :  { %28 = sbr.rel (!%p26_p9) target bundleno = 8 (0x8), region = 147 }
 0x445   :  { %1076 = vsyncpa [#allocation3], 1 }
 0x446   :  { %1078 = vsyncpa [#allocation3 + $0x1], 1 }
 0x447   :  { %1079 = vsyncpa [#allocation6], 1 }
 0x448   :  { %1080 = vsyncpa [#allocation4], 1 }
 0x449   :  { %1082 = vsyncpa [#allocation4 + $0x1], 1 }

</bundles_post_ra>
